<compile_context>
chip_gen: v7x
topology: tpu7x:2x2x1
jax: 0.10.0
libtpu: 0.0.40
codegen_flags: <defaults>
</compile_context>

<pallas_src>
import functools

import jax
import jax.numpy as jnp
from jax.experimental import pallas as pl
from jax.experimental.pallas import tpu as pltpu


def _dkd_kernel(params_ref, target_ref, ls_ref, lt_ref, out_ref, *, total_b):
    """One batch tile of the DKD loss.

    params_ref : SMEM f32[3] = [alpha, beta, 1/temperature]
    target_ref : VMEM i32[TB, 1]
    ls_ref     : VMEM [TB, C]  student logits (native dtype)
    lt_ref     : VMEM [TB, C]  teacher logits (native dtype)
    out_ref    : VMEM f32[8, 128]  per-block partial sum (broadcast-filled)
    """
    TB, C = ls_ref.shape
    alpha = params_ref[0]
    beta = params_ref[1]
    inv_t = params_ref[2]

    # Cast in-kernel; scale by 1/T with a multiply (no full-tile divide).
    ls = ls_ref[...].astype(jnp.float32) * inv_t      # [TB, C]
    lt = lt_ref[...].astype(jnp.float32) * inv_t      # [TB, C]

    # One-hot target mask built from the per-row class index.
    tgt = target_ref[...]                              # [TB, 1] int32
    col = jax.lax.broadcasted_iota(jnp.int32, (TB, C), 1)
    gt_mask = col == tgt                               # [TB, C] bool

    def _log_softmax(x):
        m = jnp.max(x, axis=1, keepdims=True)
        z = x - m
        return z - jnp.log(jnp.sum(jnp.exp(z), axis=1, keepdims=True))

    log_ps = _log_softmax(ls)                          # [TB, C]
    log_pt = _log_softmax(lt)                          # [TB, C]
    pt = jnp.exp(log_pt)                               # [TB, C]

    # Target-class log-probabilities (one masked reduce each).
    log_ps_t = jnp.sum(jnp.where(gt_mask, log_ps, 0.0), axis=1, keepdims=True)  # [TB,1]
    log_pt_t = jnp.sum(jnp.where(gt_mask, log_pt, 0.0), axis=1, keepdims=True)  # [TB,1]

    ps0 = jnp.exp(log_ps_t)                            # student target prob
    pt0 = jnp.exp(log_pt_t)                            # teacher target prob
    ps1 = 1.0 - ps0                                    # student non-target mass
    pt1 = 1.0 - pt0                                    # teacher non-target mass

    # ---- TCKD: binary (target vs non-target) KL(teacher || student) --------
    tckd0 = pt0 * (log_pt_t - log_ps_t)
    tckd1 = jnp.where(pt1 > 0.0,
                      pt1 * (jnp.log(pt1) - jnp.log(ps1)),
                      0.0)                             # kl_div: q==0 -> 0
    row_tckd = tckd0 + tckd1                           # [TB, 1]

    # ---- NCKD: KL over non-target classes, derived from the same softmaxes.
    # For j != target:  pt2_j = pt_j / pt1,
    #                   log_pt2_j = log_pt_j - log(pt1),
    #                   log_ps2_j = log_ps_j - log(ps1)
    # => sum_j pt2_j (log_pt2_j - log_ps2_j)
    #    = (1/pt1) * sum_{j!=t} pt_j (log_pt_j - log_ps_j) + log(ps1) - log(pt1)
    kl_elem = pt * (log_pt - log_ps)                   # [TB, C]
    nt_kl = jnp.sum(jnp.where(gt_mask, 0.0, kl_elem), axis=1, keepdims=True)
    row_nckd = jnp.where(pt1 > 0.0,
                         nt_kl / pt1 + (jnp.log(ps1) - jnp.log(pt1)),
                         0.0)                          # [TB, 1]

    combined = alpha * row_tckd + beta * row_nckd      # [TB, 1]

    # Mask padded rows of a ragged last batch block (global row >= B).
    row = jax.lax.broadcasted_iota(jnp.int32, (TB, 1), 0) + pl.program_id(0) * TB
    combined = jnp.where(row < total_b, combined, 0.0)

    partial = jnp.sum(combined)                        # scalar partial sum
    out_ref[...] = jnp.full((8, 128), partial, dtype=jnp.float32)


def dkd_loss(logits_student, logits_teacher, target, alpha, beta, temperature):
    B, C = logits_student.shape

    # Batch tile size: 2 logit operands x 2 pipeline buffers, budgeted on an
    # f32-equivalent footprint so in-kernel f32 temporaries also fit VMEM on
    # every generation (v7x has only 64 MiB).
    budget_bytes = 8 * 1024 * 1024
    bytes_per_row_f32 = 2 * 2 * C * 4
    tb = max(8, min(512, budget_bytes // max(bytes_per_row_f32, 1)))
    tb = (int(tb) // 8) * 8
    b_pad = -(-B // 8) * 8
    tb = min(tb, b_pad)
    num_blocks = -(-B // tb)

    target2d = target.reshape(B, 1).astype(jnp.int32)
    params = jnp.stack([
        jnp.asarray(alpha, jnp.float32),
        jnp.asarray(beta, jnp.float32),
        1.0 / jnp.asarray(temperature, jnp.float32),
    ])

    kernel = functools.partial(_dkd_kernel, total_b=B)

    out = pl.pallas_call(
        kernel,
        out_shape=jax.ShapeDtypeStruct((num_blocks * 8, 128), jnp.float32),
        grid=(num_blocks,),
        in_specs=[
            pl.BlockSpec(memory_space=pltpu.MemorySpace.SMEM),   # params (3,)
            pl.BlockSpec((tb, 1), lambda i: (i, 0)),             # target [B,1]
            pl.BlockSpec((tb, C), lambda i: (i, 0)),             # student logits
            pl.BlockSpec((tb, C), lambda i: (i, 0)),             # teacher logits
        ],
        out_specs=pl.BlockSpec((8, 128), lambda i: (i, 0)),      # per-block partial
        compiler_params=pltpu.CompilerParams(
            dimension_semantics=("parallel",),
            vmem_limit_bytes=64 * 1024 * 1024,
        ),
    )(params, target2d, logits_student, logits_teacher)

    partials = out.reshape(num_blocks, 8, 128)[:, 0, 0]
    scale = jnp.asarray(temperature, jnp.float32) ** 2 / B
    return jnp.sum(partials) * scale


def _dkd_ref(logits_student, logits_teacher, target, alpha, beta, temperature):
    """Pure-JAX reference mirroring the PyTorch forward.

    F.kl_div(input, target) computes target * (log(target) - input) with the
    target == 0 entries contributing exactly 0 (torch uses a `where(target>0)`),
    which is reproduced here (the previous reference NaN'ed on 0*log(0))."""
    B, C = logits_student.shape
    gt = jax.nn.one_hot(target, C, dtype=jnp.float32)
    other = 1.0 - gt

    def kl_div_sum(log_p, q):
        safe_q = jnp.where(q > 0, q, 1.0)
        return jnp.sum(jnp.where(q > 0, q * (jnp.log(safe_q) - log_p), 0.0))

    ps = jax.nn.softmax(logits_student / temperature, axis=1)
    pt = jax.nn.softmax(logits_teacher / temperature, axis=1)
    ps_cat = jnp.concatenate(
        [jnp.sum(ps * gt, 1, keepdims=True), jnp.sum(ps * other, 1, keepdims=True)], 1)
    pt_cat = jnp.concatenate(
        [jnp.sum(pt * gt, 1, keepdims=True), jnp.sum(pt * other, 1, keepdims=True)], 1)
    tckd = kl_div_sum(jnp.log(ps_cat), pt_cat) * temperature ** 2 / B

    pt2 = jax.nn.softmax(logits_teacher / temperature - 1000.0 * gt, axis=1)
    log_ps2 = jax.nn.log_softmax(logits_student / temperature - 1000.0 * gt, axis=1)
    nckd = kl_div_sum(log_ps2, pt2) * temperature ** 2 / B

    return alpha * tckd + beta * nckd


if __name__ == "__main__":
    B, C = 8, 128
    key = jax.random.PRNGKey(0)
    k1, k2, k3 = jax.random.split(key, 3)
    logits_student = jax.random.normal(k1, (B, C), dtype=jnp.float32)
    logits_teacher = jax.random.normal(k2, (B, C), dtype=jnp.float32)
    target = jax.random.randint(k3, (B,), 0, C, dtype=jnp.int32)
    alpha, beta, temperature = 1.0, 8.0, 4.0

    loss = dkd_loss(logits_student, logits_teacher, target, alpha, beta, temperature)
    loss = jax.block_until_ready(loss)

    ref = _dkd_ref(logits_student, logits_teacher, target, alpha, beta, temperature)
    ref = jax.block_until_ready(ref)

    assert bool(jnp.isfinite(loss)), loss
    assert jnp.allclose(loss, ref, rtol=1e-4, atol=1e-4), (loss, ref)

    print("KERNEL_OK")
</pallas_src>

<mosaic_0001>
module attributes {stable_mosaic.version = 11 : i64} {
  func.func @_dkd_kernel(%arg0: i32, %arg1: memref<3xf32, #tpu.memory_space<smem>>, %arg2: memref<8x1xi32, #tpu.memory_space<vmem>>, %arg3: memref<8x128xf32, #tpu.memory_space<vmem>>, %arg4: memref<8x128xf32, #tpu.memory_space<vmem>>, %arg5: memref<8x128xf32, #tpu.memory_space<vmem>>) attributes {dimension_semantics = [#tpu.dimension_semantics<parallel>], iteration_bounds = array<i64: 1>, scalar_prefetch = 0 : i64, scratch_operands = 0 : i64, tpu.core_type = #tpu.core_type<tc>, window_params = [{transform_indices = @transform_0, window_bounds = array<i64: 3>}, {transform_indices = @transform_1, window_bounds = array<i64: 8, 1>}, {transform_indices = @transform_2, window_bounds = array<i64: 8, 128>}, {transform_indices = @transform_3, window_bounds = array<i64: 8, 128>}, {transform_indices = @transform_4, window_bounds = array<i64: 8, 128>}]} {
    %c0 = arith.constant 0 : index
    %0 = memref.load %arg1[%c0] : memref<3xf32, #tpu.memory_space<smem>>
    %c1 = arith.constant 1 : index
    %1 = memref.load %arg1[%c1] : memref<3xf32, #tpu.memory_space<smem>>
    %c2 = arith.constant 2 : index
    %2 = memref.load %arg1[%c2] : memref<3xf32, #tpu.memory_space<smem>>
    %c0_0 = arith.constant 0 : index
    %c0_1 = arith.constant 0 : index
    %3 = vector.load %arg3[%c0_0, %c0_1] : memref<8x128xf32, #tpu.memory_space<vmem>>, vector<8x128xf32>
    %4 = vector.broadcast %2 : f32 to vector<8x128xf32>
    %5 = arith.mulf %3, %4 : vector<8x128xf32>
    %c0_2 = arith.constant 0 : index
    %c0_3 = arith.constant 0 : index
    %6 = vector.load %arg4[%c0_2, %c0_3] : memref<8x128xf32, #tpu.memory_space<vmem>>, vector<8x128xf32>
    %7 = vector.broadcast %2 : f32 to vector<8x128xf32>
    %8 = arith.mulf %6, %7 : vector<8x128xf32>
    %c0_4 = arith.constant 0 : index
    %c0_5 = arith.constant 0 : index
    %9 = vector.load %arg2[%c0_4, %c0_5] : memref<8x1xi32, #tpu.memory_space<vmem>>, vector<8x1xi32>
    %10 = tpu.iota {dimensions = array<i32: 1>} : vector<8x128xi32>
    %11 = vector.broadcast %9 : vector<8x1xi32> to vector<8x128xi32>
    %12 = arith.cmpi eq, %10, %11 : vector<8x128xi32>
    %cst = arith.constant dense<0xFF800000> : vector<8xf32>
    %13 = vector.multi_reduction <maximumf>, %5, %cst [1] : vector<8x128xf32> to vector<8xf32>
    %14 = vector.shape_cast %13 : vector<8xf32> to vector<8x1xf32>
    %15 = vector.broadcast %14 : vector<8x1xf32> to vector<8x128xf32>
    %16 = arith.subf %5, %15 : vector<8x128xf32>
    %17 = math.exp %16 : vector<8x128xf32>
    %cst_6 = arith.constant dense<0.000000e+00> : vector<8xf32>
    %18 = vector.multi_reduction <add>, %17, %cst_6 [1] : vector<8x128xf32> to vector<8xf32>
    %19 = vector.shape_cast %18 : vector<8xf32> to vector<8x1xf32>
    %20 = math.log %19 : vector<8x1xf32>
    %21 = vector.broadcast %20 : vector<8x1xf32> to vector<8x128xf32>
    %22 = arith.subf %16, %21 : vector<8x128xf32>
    %cst_7 = arith.constant dense<0xFF800000> : vector<8xf32>
    %23 = vector.multi_reduction <maximumf>, %8, %cst_7 [1] : vector<8x128xf32> to vector<8xf32>
    %24 = vector.shape_cast %23 : vector<8xf32> to vector<8x1xf32>
    %25 = vector.broadcast %24 : vector<8x1xf32> to vector<8x128xf32>
    %26 = arith.subf %8, %25 : vector<8x128xf32>
    %27 = math.exp %26 : vector<8x128xf32>
    %cst_8 = arith.constant dense<0.000000e+00> : vector<8xf32>
    %28 = vector.multi_reduction <add>, %27, %cst_8 [1] : vector<8x128xf32> to vector<8xf32>
    %29 = vector.shape_cast %28 : vector<8xf32> to vector<8x1xf32>
    %30 = math.log %29 : vector<8x1xf32>
    %31 = vector.broadcast %30 : vector<8x1xf32> to vector<8x128xf32>
    %32 = arith.subf %26, %31 : vector<8x128xf32>
    %33 = math.exp %32 : vector<8x128xf32>
    %cst_9 = arith.constant 0.000000e+00 : f32
    %34 = vector.broadcast %cst_9 : f32 to vector<8x128xf32>
    %35 = arith.select %12, %22, %34 : vector<8x128xi1>, vector<8x128xf32>
    %cst_10 = arith.constant dense<0.000000e+00> : vector<8xf32>
    %36 = vector.multi_reduction <add>, %35, %cst_10 [1] : vector<8x128xf32> to vector<8xf32>
    %37 = vector.shape_cast %36 : vector<8xf32> to vector<8x1xf32>
    %cst_11 = arith.constant 0.000000e+00 : f32
    %38 = vector.broadcast %cst_11 : f32 to vector<8x128xf32>
    %39 = arith.select %12, %32, %38 : vector<8x128xi1>, vector<8x128xf32>
    %cst_12 = arith.constant dense<0.000000e+00> : vector<8xf32>
    %40 = vector.multi_reduction <add>, %39, %cst_12 [1] : vector<8x128xf32> to vector<8xf32>
    %41 = vector.shape_cast %40 : vector<8xf32> to vector<8x1xf32>
    %42 = math.exp %37 : vector<8x1xf32>
    %43 = math.exp %41 : vector<8x1xf32>
    %cst_13 = arith.constant 1.000000e+00 : f32
    %44 = vector.broadcast %cst_13 : f32 to vector<8x1xf32>
    %45 = arith.subf %44, %42 : vector<8x1xf32>
    %cst_14 = arith.constant 1.000000e+00 : f32
    %46 = vector.broadcast %cst_14 : f32 to vector<8x1xf32>
    %47 = arith.subf %46, %43 : vector<8x1xf32>
    %48 = arith.subf %41, %37 : vector<8x1xf32>
    %49 = arith.mulf %43, %48 : vector<8x1xf32>
    %cst_15 = arith.constant 0.000000e+00 : f32
    %50 = vector.broadcast %cst_15 : f32 to vector<8x1xf32>
    %51 = arith.cmpf ogt, %47, %50 : vector<8x1xf32>
    %52 = math.log %47 : vector<8x1xf32>
    %53 = math.log %45 : vector<8x1xf32>
    %54 = arith.subf %52, %53 : vector<8x1xf32>
    %55 = arith.mulf %47, %54 : vector<8x1xf32>
    %cst_16 = arith.constant 0.000000e+00 : f32
    %56 = vector.broadcast %cst_16 : f32 to vector<8x1xf32>
    %57 = arith.select %51, %55, %56 : vector<8x1xi1>, vector<8x1xf32>
    %58 = arith.addf %49, %57 : vector<8x1xf32>
    %59 = arith.subf %32, %22 : vector<8x128xf32>
    %60 = arith.mulf %33, %59 : vector<8x128xf32>
    %cst_17 = arith.constant 0.000000e+00 : f32
    %61 = vector.broadcast %cst_17 : f32 to vector<8x128xf32>
    %62 = arith.select %12, %61, %60 : vector<8x128xi1>, vector<8x128xf32>
    %cst_18 = arith.constant dense<0.000000e+00> : vector<8xf32>
    %63 = vector.multi_reduction <add>, %62, %cst_18 [1] : vector<8x128xf32> to vector<8xf32>
    %64 = vector.shape_cast %63 : vector<8xf32> to vector<8x1xf32>
    %cst_19 = arith.constant 0.000000e+00 : f32
    %65 = vector.broadcast %cst_19 : f32 to vector<8x1xf32>
    %66 = arith.cmpf ogt, %47, %65 : vector<8x1xf32>
    %67 = arith.divf %64, %47 : vector<8x1xf32>
    %68 = math.log %45 : vector<8x1xf32>
    %69 = math.log %47 : vector<8x1xf32>
    %70 = arith.subf %68, %69 : vector<8x1xf32>
    %71 = arith.addf %67, %70 : vector<8x1xf32>
    %cst_20 = arith.constant 0.000000e+00 : f32
    %72 = vector.broadcast %cst_20 : f32 to vector<8x1xf32>
    %73 = arith.select %66, %71, %72 : vector<8x1xi1>, vector<8x1xf32>
    %74 = vector.broadcast %0 : f32 to vector<8x1xf32>
    %75 = arith.mulf %74, %58 : vector<8x1xf32>
    %76 = vector.broadcast %1 : f32 to vector<8x1xf32>
    %77 = arith.mulf %76, %73 : vector<8x1xf32>
    %78 = arith.addf %75, %77 : vector<8x1xf32>
    %79 = tpu.iota {dimensions = array<i32: 0>} : vector<8x1xi32>
    %c8_i32 = arith.constant 8 : i32
    %80 = arith.muli %arg0, %c8_i32 : i32
    %81 = vector.broadcast %80 : i32 to vector<8x1xi32>
    %82 = arith.addi %79, %81 : vector<8x1xi32>
    %c8_i32_21 = arith.constant 8 : i32
    %83 = vector.broadcast %c8_i32_21 : i32 to vector<8x1xi32>
    %84 = arith.cmpi slt, %82, %83 : vector<8x1xi32>
    %cst_22 = arith.constant 0.000000e+00 : f32
    %85 = vector.broadcast %cst_22 : f32 to vector<8x1xf32>
    %86 = arith.select %84, %78, %85 : vector<8x1xi1>, vector<8x1xf32>
    %87 = vector.shape_cast %86 : vector<8x1xf32> to vector<1x8x1xf32>
    %cst_23 = arith.constant dense<0.000000e+00> : vector<1xf32>
    %88 = vector.multi_reduction <add>, %87, %cst_23 [1, 2] : vector<1x8x1xf32> to vector<1xf32>
    %89 = vector.shape_cast %88 : vector<1xf32> to vector<1x1x1xf32>
    %90 = vector.extract %89[0, 0, 0] : f32 from vector<1x1x1xf32>
    %91 = vector.broadcast %90 : f32 to vector<8x128xf32>
    %c0_24 = arith.constant 0 : index
    %c0_25 = arith.constant 0 : index
    %92 = vector.load %arg5[%c0_24, %c0_25] : memref<8x128xf32, #tpu.memory_space<vmem>>, vector<8x128xf32>
    tpu.vector_store %arg5[%c0_24, %c0_25], %91 {strides = array<i32>} : memref<8x128xf32, #tpu.memory_space<vmem>>, vector<8x128xf32>,
    return
  }
  func.func @transform_0(%arg0: i32) -> i32 {
    %c0_i32 = arith.constant 0 : i32
    %c0_i32_0 = arith.constant 0 : i32
    return %c0_i32 : i32
  }
  func.func @transform_1(%arg0: i32) -> (i32, i32) {
    %c0_i32 = arith.constant 0 : i32
    %c0_i32_0 = arith.constant 0 : i32
    return %arg0, %c0_i32 : i32, i32
  }
  func.func @transform_2(%arg0: i32) -> (i32, i32) {
    %c0_i32 = arith.constant 0 : i32
    %c0_i32_0 = arith.constant 0 : i32
    return %arg0, %c0_i32 : i32, i32
  }
  func.func @transform_3(%arg0: i32) -> (i32, i32) {
    %c0_i32 = arith.constant 0 : i32
    %c0_i32_0 = arith.constant 0 : i32
    return %arg0, %c0_i32 : i32, i32
  }
  func.func @transform_4(%arg0: i32) -> (i32, i32) {
    %c0_i32 = arith.constant 0 : i32
    %c0_i32_0 = arith.constant 0 : i32
    return %arg0, %c0_i32 : i32, i32
  }
}

</mosaic_0001>

<bundles_post_ra>
// kernel: tpu_custom_call.1
= control target key start
LH: loop header
LB: loop body
LE: loop exit
PB: predicated region body
PF: predicated region fallthrough
CT: control target
= control target key end

     0   :  { %9 = vsyncpa [#allocation5], 0  ;;  %s404_s0 = inlined_call_operand.hbm [shape: f32[3], index: 0, kind: input, shape index: {}]   ;;  %s405_s1 = inlined_call_operand.hbm [shape: s32[8,1], index: 1, kind: input, shape index: {}]   ;;  %s406_s2 = inlined_call_operand.hbm [shape: f32[8,128], index: 2, kind: input, shape index: {}]   ;;  %s407_s3 = inlined_call_operand.hbm [shape: f32[8,128], index: 3, kind: input, shape index: {}]   ;;  %s408_s4 = inlined_call_operand.hbm [shape: f32[8,128], index: 4, kind: output, shape index: {}]  }
   0x1   :  { %10 = vsyncpa [#allocation3], 0 }
   0x2   :  { %11 = vsyncpa [#allocation8], 0 }
   0x3   :  { %12 = vsyncpa [#allocation4], 0  ;;  %s313_s15 = smov [#allocation7]   ;;  %s314_s17 = smov [#allocation6]  }
   0x4   :  { %s37_s16 = sshll.u32 %s313_s15, 4  ;;  %s27_s18 = sshll.u32 %s314_s17, 4  ;;  %s38_s16 = int_to_ptr.vmem [resolvable:$true] %s37_s16  ;;  %s28_s18 = int_to_ptr.vmem [resolvable:$true] %s27_s18 }
   0x5   :  { %s207_s21 = scalar_lea.hbm %s406_s2, 128 }
   0x6   :  { %p208_p0 = scmp.ne.s32.totalorder %s406_s2, %s207_s21  ;;  %p211_p1 = scmp.lt.u32.totalorder %s207_s21, %s406_s2 }
   0x8   :  { %p213_p2 = pnand %p211_p1, %p208_p0 }
   0xa   :  { %216 = shalt.err (!%p213_p2)
}
   0xb   :  { %s217_s26 = scalar_lea.vmem %s38_s16, 128  ;;  %p222_p4 = scmp.lt.s32.totalorder %s38_s16, %s38_s16 }
   0xc   :  { %p218_p3 = scmp.ne.s32.totalorder %s38_s16, %s217_s26  ;;  %p223_p5 = scmp.lt.s32.totalorder %s217_s26, %s217_s26 }
   0xe   :  { %p224_p6 = por %p223_p5, %p222_p4 }
  0x10   :  { %p225_p7 = pnand %p224_p6, %p218_p3 }
  0x12   :  { %228 = shalt.err (!%p225_p7)
}
  0x13   :  { %40 = dma.hbm_to_vmem [thread:$0]  %s406_s2, 128, %s38_s16, [#allocation8]  }
  0x14   :  { %s229_s5 = scalar_lea.hbm %s404_s0, 16 }
  0x15   :  { %p230_p8 = scmp.ne.s32.totalorder %s404_s0, %s229_s5  ;;  %p233_p9 = scmp.lt.u32.totalorder %s229_s5, %s404_s0 }
  0x17   :  { %p235_p10 = pnand %p233_p9, %p230_p8 }
  0x19   :  { %238 = shalt.err (!%p235_p10)
}
  0x1a   :  { %s315_s10 = smov [#allocation2]   ;;  %s239_s14 = scalar_lea.hbm %s405_s1, 128 }
  0x1b   :  { %20 = dma.hbm_to_smem %s404_s0, 16, %s315_s10, [#allocation5]  }
  0x1c   :  { %p240_p11 = scmp.ne.s32.totalorder %s405_s1, %s239_s14  ;;  %p243_p12 = scmp.lt.u32.totalorder %s239_s14, %s405_s1 }
  0x1e   :  { %p245_p13 = pnand %p243_p12, %p240_p11 }
  0x20   :  { %248 = shalt.err (!%p245_p13)
}
  0x21   :  { %s249_s20 = scalar_lea.vmem %s28_s18, 128  ;;  %p254_p1 = scmp.lt.s32.totalorder %s28_s18, %s28_s18 }
  0x22   :  { %p250_p0 = scmp.ne.s32.totalorder %s28_s18, %s249_s20  ;;  %p255_p2 = scmp.lt.s32.totalorder %s249_s20, %s249_s20 }
  0x24   :  { %p256_p3 = por %p255_p2, %p254_p1 }
  0x26   :  { %p257_p4 = pnand %p256_p3, %p250_p0 }
  0x28   :  { %260 = shalt.err (!%p257_p4)
}
  0x29   :  { %30 = dma.hbm_to_vmem [thread:$0]  %s405_s1, 128, %s28_s18, [#allocation3]  }
  0x2a   :  { %s316_s22 = smov [#allocation9]   ;;  %s261_s26 = scalar_lea.hbm %s407_s3, 128 }
  0x2b   :  { %s47_s23 = sshll.u32 %s316_s22, 4  ;;  %p262_p5 = scmp.ne.s32.totalorder %s407_s3, %s261_s26  ;;  %s48_s23 = int_to_ptr.vmem [resolvable:$true] %s47_s23 }
  0x2c   :  { %p265_p6 = scmp.lt.u32.totalorder %s261_s26, %s407_s3 }
  0x2e   :  { %p267_p7 = pnand %p265_p6, %p262_p5 }
  0x30   :  { %270 = shalt.err (!%p267_p7)
}
  0x31   :  { %s271_s5 = scalar_lea.vmem %s48_s23, 128  ;;  %p276_p9 = scmp.lt.s32.totalorder %s48_s23, %s48_s23 }
  0x32   :  { %p272_p8 = scmp.ne.s32.totalorder %s48_s23, %s271_s5  ;;  %p277_p10 = scmp.lt.s32.totalorder %s271_s5, %s271_s5 }
  0x34   :  { %p278_p11 = por %p277_p10, %p276_p9 }
  0x36   :  { %p279_p12 = pnand %p278_p11, %p272_p8 }
  0x38   :  { %282 = shalt.err (!%p279_p12)
}
  0x39   :  { %50 = dma.hbm_to_vmem [thread:$0]  %s407_s3, 128, %s48_s23, [#allocation8]  }
  0x3a   :  { %305 = dma.done.wait [#allocation5], 16  }
  0x3b   :  { %306 = vsyncadd [#allocation5], 4294967280 }
  0x3c   :  { %307 = dma.done.wait [#allocation3], 128  }
  0x3d   :  { %308 = vsyncadd [#allocation3], 4294967168 }
  0x3e   :  { %309 = dma.done.wait [#allocation8], 256  }
  0x3f   :  { %310 = vsyncadd [#allocation8], 4294967040 }
  0x40   :  { %63 = sfence }
  0x41   :  { %s177_s6 = sld [smem:[#allocation2 + $0x2]]  ;;  %v67_v0 = vld [vmem:[#allocation7] sm:$0xff]  ;;  %v70_v2 = vld [vmem:[#allocation9] sm:$0xff]  ;;  %v72_v5 = vld [vmem:[#allocation6] sm:$0xff]  ;;  %v317_v6 = vmov 0   ;;  %v73_v17 = vlaneseq  ;;  %s64_s3 = sld [smem:[#allocation2]] }
  0x42   :  { %186 = vset.pattern.permute.xlu0 %v317_v6  ;;  %s176_s7 = sld [smem:[#allocation2 + $0x1]]  ;;  %vm146_vm2 = vcmask 7168   ;;  %s318_s8 = smov [#allocation10]  }
  0x43   :  { %v74_v18 = vand.u32 127, %v73_v17  ;;  %s165_s9 = sshll.u32 %s318_s8, 4  ;;  %s166_s9 = int_to_ptr.vmem [resolvable:$true] %s165_s9 }
  0x44   :  { %s283_s11 = scalar_lea.vmem %s166_s9, 128  ;;  %p288_p0 = scmp.lt.s32.totalorder %s166_s9, %s166_s9 }
  0x45   :  { %p284_p13 = scmp.ne.s32.totalorder %s166_s9, %s283_s11  ;;  %p289_p1 = scmp.lt.s32.totalorder %s283_s11, %s283_s11 }
  0x47   :  { %v68_v1 = vstv %s177_s6  ;;  %v134_v56 = vstv %s64_s3  ;;  %p290_p2 = por %p289_p1, %p288_p0 }
  0x48   :  { %v69_v3 = vmul.f32 %v68_v1, %v67_v0  ;;  %v71_v4 = vmul.f32 %v70_v2, %v68_v1  ;;  %v136_v57 = vstv %s176_s7 }
  0x49   :  { %p291_p3 = pnand %p290_p2, %p284_p13 }
  0x4a   :  { %79 = vmax.xlane.f32.xlu0 %v69_v3 }
  0x4e   :  { %89 = vmax.xlane.f32.xlu0 %v71_v4 }
  0x64   :  { %76 = vperm.xlu0 %186, %v72_v5  }
  0xd7   :  { %v80_v7 = vpop.xlane.xlu0 %79 }
  0xd8   :  { %v81_v8 = vsub.f32 %v69_v3, %v80_v7 }
  0xda   :  { %v82_v9 = vmul.f32 1.442695, %v81_v8 }
  0xdb   :  { %v90_v10 = vpop.xlane.xlu0 %89 }
  0xdc   :  { %v91_v11 = vsub.f32 %v71_v4, %v90_v10  ;;  %187 = vpow2.f32 %v82_v9 }
  0xde   :  { %v92_v12 = vmul.f32 1.442695, %v91_v11 }
  0xe0   :  { %189 = vpow2.f32 %v92_v12 }
  0xe3   :  { %v77_v19 = vpop.permute.xlu0 %76 }
  0xe4   :  { %vm78_vm0 = vcmp.eq.s32.totalorder %v74_v18, %v77_v19 }
  0xe6   :  { %v188_v13 = vpop.eup %187 }
  0xe7   :  { %84 = vadd.xlane.f32.xlu1 %v188_v13 }
  0xea   :  { %v190_v14 = vpop.eup %189 }
  0xeb   :  { %94 = vadd.xlane.f32.xlu1 %v190_v14 }
 0x174   :  { %v85_v15 = vpop.xlane.xlu1 %84 }
 0x175   :  { %191 = vlog2.f32 %v85_v15 }
 0x178   :  { %v95_v16 = vpop.xlane.xlu1 %94 }
 0x179   :  { %193 = vlog2.f32 %v95_v16 }
 0x17f   :  { %v192_v20 = vpop.eup %191 }
 0x180   :  { %v87_v21 = vmul.f32 0.6931472, %v192_v20 }
 0x182   :  { %v88_v22 = vsub.f32 %v81_v8, %v87_v21 }
 0x183   :  { %v194_v23 = vpop.eup %193 }
 0x184   :  { %v97_v24 = vmul.f32 0.6931472, %v194_v23  ;;  %v101_v25 = vsel %vm78_vm0, %v88_v22, 0.0 }
 0x185   :  { %102 = vadd.xlane.f32.xlu1 %v101_v25 }
 0x186   :  { %v98_v26 = vsub.f32 %v91_v11, %v97_v24 }
 0x188   :  { %v99_v27 = vmul.f32 1.442695, %v98_v26  ;;  %v104_v28 = vsel %vm78_vm0, %v98_v26, 0.0  ;;  %v124_v29 = vsub.f32 %v98_v26, %v88_v22 }
 0x189   :  { %105 = vadd.xlane.f32.xlu1 %v104_v28 }
 0x18a   :  { %195 = vpow2.f32 %v99_v27 }
 0x194   :  { %v196_v30 = vpop.eup %195 }
 0x195   :  { %v125_v31 = vmul.f32 %v196_v30, %v124_v29 }
 0x197   :  { %v126_v32 = vsel %vm78_vm0, 0.0, %v125_v31 }
 0x198   :  { %127 = vadd.xlane.f32.xlu1 %v126_v32 }
 0x212   :  { %v103_v33 = vpop.xlane.xlu1 %102 }
 0x213   :  { %v107_v34 = vmul.f32 1.442695, %v103_v33 }
 0x215   :  { %197 = vpow2.f32 %v107_v34 }
 0x216   :  { %v106_v35 = vpop.xlane.xlu1 %105 }
 0x217   :  { %v109_v36 = vmul.f32 1.442695, %v106_v35  ;;  %v113_v50 = vsub.f32 %v106_v35, %v103_v33 }
 0x219   :  { %199 = vpow2.f32 %v109_v36 }
 0x21f   :  { %v198_v37 = vpop.eup %197 }
 0x220   :  { %v111_v38 = vsub.f32 1.0, %v198_v37 }
 0x222   :  { %201 = vlog2.f32 %v111_v38 }
 0x223   :  { %v200_v39 = vpop.eup %199 }
 0x224   :  { %v112_v40 = vsub.f32 1.0, %v200_v39  ;;  %v114_v53 = vmul.f32 %v200_v39, %v113_v50 }
 0x225   :  { %v128_v46 = vpop.xlane.xlu1 %127 }
 0x226   :  { %203 = vlog2.f32 %v112_v40  ;;  %vm115_vm1 = vcmp.gt.f32.partialorder %v112_v40, 0.0 }
 0x227   :  { %205 = vrcp.f32 %v112_v40 }
 0x22c   :  { %v202_v41 = vpop.eup %201 }
 0x22d   :  { %v119_v45 = vmul.f32 0.6931472, %v202_v41 }
 0x230   :  { %v204_v42 = vpop.eup %203 }
 0x231   :  { %v206_v43 = vpop.eup %205  ;;  %v117_v44 = vmul.f32 0.6931472, %v204_v42 }
 0x232   :  { %v130_v49 = vmul.f32 %v206_v43, %v128_v46 }
 0x233   :  { %v120_v47 = vsub.f32 %v117_v44, %v119_v45  ;;  %v131_v48 = vsub.f32 %v119_v45, %v117_v44 }
 0x235   :  { %v121_v51 = vmul.f32 %v120_v47, %v112_v40  ;;  %v132_v52 = vadd.f32 %v131_v48, %v130_v49 }
 0x237   :  { %v122_v54 = vsel %vm115_vm1, %v121_v51, 0.0  ;;  %v133_v55 = vsel %vm115_vm1, %v132_v52, 0.0 }
 0x238   :  { %v123_v58 = vadd.f32 %v122_v54, %v114_v53  ;;  %v137_v60 = vmul.f32 %v136_v57, %v133_v55 }
 0x23a   :  { %v135_v59 = vmul.f32 %v134_v56, %v123_v58 }
 0x23c   :  { %v138_v61 = vadd.f32 %v137_v60, %v135_v59 }
 0x23e   :  { %v147_v62 = vsel %vm146_vm2, %v138_v61, 0.0 }
 0x23f   :  { %148 = vadd.xlane.f32.xlu1 %v147_v62 }
 0x2cc   :  { %v149_v63 = vpop.xlane.xlu1 %148 }
 0x2cd   :  { %v150_v0 = vrot.slane %v149_v63, 4 }
 0x2cf   :  { %v151_v1 = vadd.f32 %v150_v0, %v149_v63 }
 0x2d1   :  { %v152_v2 = vrot.slane %v151_v1, 2 }
 0x2d3   :  { %v153_v3 = vadd.f32 %v152_v2, %v151_v1 }
 0x2d5   :  { %v154_v4 = vrot.slane %v153_v3, 1 }
 0x2d7   :  { %v155_v5 = vadd.f32 %v154_v4, %v153_v3 }
 0x2d9   :  { %178 = vpush %v155_v5 }
 0x30a   :  { %s179_s10 = spop %178 }
 0x30b   :  { %v157_v6 = vstv %s179_s10 }
 0x30c   :  { %158 = vst [vmem:[#allocation10] sm:$0xff] %v157_v6 }
 0x30d   :  { %294 = shalt.err (!%p291_p3)
}
 0x30e   :  { %s295_s13 = scalar_lea.hbm %s408_s4, 128 }
 0x30f   :  { %p296_p4 = scmp.ne.s32.totalorder %s408_s4, %s295_s13  ;;  %p299_p5 = scmp.lt.u32.totalorder %s295_s13, %s408_s4 }
 0x311   :  { %p301_p6 = pnand %p299_p5, %p296_p4 }
 0x313   :  { %304 = shalt.err (!%p301_p6)
}
 0x314   :  { %168 = dma.vmem_to_hbm [thread:$0]  %s166_s9, 128, %s408_s4, [#allocation4]  }
 0x315   :  { %311 = dma.done.wait [#allocation4], 128  }
 0x316   :  { %312 = vsyncadd [#allocation4], 4294967168 }
 0x317   :  { %172 = vsyncpa [#allocation3], 1 }
 0x318   :  { %173 = vsyncpa [#allocation8], 1 }
 0x319   :  { %174 = vsyncpa [#allocation4], 1 }
 0x31a   :  { %175 = vsyncpa [#allocation5], 1 }

</bundles_post_ra>
